<compile_context>
chip_gen: v7x
topology: tpu7x:2x2x1
jax: 0.10.0
libtpu: 0.0.40
codegen_flags: <defaults>
</compile_context>

<pallas_src>
import functools

import jax
import jax.numpy as jnp
from jax.experimental import pallas as pl
from jax.experimental.pallas import tpu as pltpu


@functools.lru_cache(maxsize=None)
def _roll_is_forward():
    """True iff pltpu.roll(x, k, axis) == jnp.roll(x, k, axis) (out[i]=in[i-k]).

    One-time, cached hardware probe so the conv lane shifts keep the right
    rotation direction across jax / Mosaic versions.
    """
    def probe(x_ref, o_ref):
        o_ref[...] = pltpu.roll(x_ref[...], 1, axis=1)

    x = jnp.tile(jnp.arange(128, dtype=jnp.float32), (8, 1))
    out = pl.pallas_call(
        probe, out_shape=jax.ShapeDtypeStruct((8, 128), jnp.float32))(x)
    return bool(out[0, 0] == 127.0)


def _make_kernel(F, Cp, H, W, roll_forward, mxu_dtype):
    HW = H * W
    L = F * HW
    sign = -1 if roll_forward else 1

    def lane_shift(slab, s):
        # shifted[:, q] = slab[:, (q + s) mod L].  Every wrapped lane is a
        # per-image out-of-bounds position and is overridden by the reflection
        # selects below, so rolling across the image fold is safe.
        if s == 0:
            return slab
        return pltpu.roll(slab, (sign * s) % L, axis=1)

    def kernel(x_ref, w1_ref, b1_ref, w2_ref, b2_ref, o_ref):
        # Lane-position masks over the folded axis q = f*HW + h*W + w.
        q = jax.lax.broadcasted_iota(jnp.int32, (1, L), 1)
        p = q % HW                               # position inside each image
        mask_left = (p % W) == 0
        mask_right = (p % W) == (W - 1)
        mask_top = p < W
        mask_bot = p >= (H - 1) * W

        def conv3x3(slab, w_ref, b_ref):
            # 8 in-register lane rotations (XLU), cached once per conv.
            raw = {(dh, dw): lane_shift(slab, dh * W + dw)
                   for dh in (-1, 0, 1) for dw in (-1, 0, 1)}

            def colfix(dh, dw):   # width reflection: w=0 -> col 1, w=W-1 -> col W-2
                if dw == -1:
                    return jnp.where(mask_left, raw[(dh, 1)], raw[(dh, -1)])
                if dw == 1:
                    return jnp.where(mask_right, raw[(dh, -1)], raw[(dh, 1)])
                return raw[(dh, 0)]

            # Build each boundary-fixed tap right before appending it to the
            # stacked-K operand (keeps vreg live ranges bounded).
            taps = []
            for dh in (-1, 0, 1):
                for dw in (-1, 0, 1):
                    if dh == -1:              # height reflection: h=0 reads row 1
                        t = jnp.where(mask_top, colfix(1, dw), colfix(-1, dw))
                    elif dh == 1:             # h=H-1 reads row H-2
                        t = jnp.where(mask_bot, colfix(-1, dw), colfix(1, dw))
                    else:
                        t = colfix(0, dw)
                    taps.append(t.astype(mxu_dtype))
            stacked = jnp.concatenate(taps, axis=0)           # (9*Cp, F*HW)
            # Single deep MXU dot (K = 9*Cp) instead of nine K=Cp dots.
            acc = jnp.dot(w_ref[...], stacked,
                          preferred_element_type=jnp.float32)
            return acc + b_ref[...]                           # (Cp,1) bias bcast

        def inorm(v):
            # InstanceNorm2d defaults: affine=False, eps=1e-5, biased variance.
            mean = jnp.mean(v, axis=1, keepdims=True)
            cen = v - mean
            var = jnp.mean(cen * cen, axis=1, keepdims=True)
            return cen * jax.lax.rsqrt(var + 1e-5)

        x = x_ref[0]                                          # (Cp, F*HW)

        acc1 = conv3x3(x, w1_ref, b1_ref)
        # Per-image InstanceNorm + ReLU on HW-wide lane slices of the fold.
        segs = [jnp.maximum(inorm(acc1[:, f * HW:(f + 1) * HW]), 0.0)
                for f in range(F)]
        h = segs[0] if F == 1 else jnp.concatenate(segs, axis=1)

        acc2 = conv3x3(h, w2_ref, b2_ref)
        # Second norm fused into the residual; one full-width lane-dense store.
        outs = [x[:, f * HW:(f + 1) * HW] + inorm(acc2[:, f * HW:(f + 1) * HW])
                for f in range(F)]
        o_ref[0] = outs[0] if F == 1 else jnp.concatenate(outs, axis=1)

    return kernel


def _pick_fold(N, Cp, HW):
    """Images folded into each grid step (generation- and VMEM-aware)."""
    # Per-step working set ~ (in+out blocks, double-buffered) + ~27 tap/stacked
    # slab temporaries, each ~Cp*F*HW f32.  Keep it well under the 32 MiB
    # default scoped-VMEM limit (v7x only has 64 MiB physical VMEM per core).
    budget_bytes = 16 * 1024 * 1024
    per_image_bytes = 32 * Cp * HW * 4
    max_fold = max(1, min(64, budget_bytes // per_image_bytes))
    # The grid is a sequential loop on one TensorCore: v5e/v6e want 1 step;
    # only multi-TensorCore chips (v7x) benefit from >= 2 parallel steps.
    try:
        kind = jax.devices()[0].device_kind.lower()
    except Exception:
        kind = ""
    multi_tc = ("v7" in kind) or ("7x" in kind)
    min_steps = 2 if (multi_tc and N % 2 == 0) else 1
    fold = 1
    for f in range(1, N + 1):
        if N % f == 0 and f <= max_fold and (N // f) >= min_steps:
            fold = f
    return fold


def residual_block(x, w1, b1, w2, b2, imgs_per_step=None, mxu_dtype=jnp.float32):
    # x: (N, C, H, W) f32; w*: (C, C, 3, 3) torch OIHW; b*: (C,)
    N, C, H, W = x.shape
    assert H >= 2 and W >= 2, "ReflectionPad2d(1) needs spatial dims >= 2"
    HW = H * W
    Cp = -(-C // 8) * 8                       # pad channels to a sublane tile

    F = imgs_per_step if imgs_per_step is not None else _pick_fold(N, Cp, HW)
    assert N % F == 0
    steps = N // F
    L = F * HW  # lane-dense when H*W % 128 == 0 (else still correct, just slower)

    # Lane-dense fold (wrapper-side layout plumbing): (N,C,H,W) -> (steps, Cp, F*HW)
    # with zero-padded channels so every sublane offset in the kernel is 8-aligned.
    xf = jnp.pad(x.astype(jnp.float32), ((0, 0), (0, Cp - C), (0, 0), (0, 0)))
    xf = xf.reshape(steps, F, Cp, HW).transpose(0, 2, 1, 3).reshape(steps, Cp, L)

    def fuse(w, b):
        # (C,C,3,3) OIHW -> (Cp, 9*Cp); column index (kh*3+kw)*Cp + ci.  Padded
        # rows/cols are zero so padded channels stay exactly zero in the kernel.
        wp = jnp.pad(w.astype(jnp.float32),
                     ((0, Cp - C), (0, Cp - C), (0, 0), (0, 0)))
        wf = jnp.transpose(wp, (0, 2, 3, 1)).reshape(Cp, 9 * Cp).astype(mxu_dtype)
        bf = jnp.pad(b.astype(jnp.float32), (0, Cp - C)).reshape(Cp, 1)
        return wf, bf

    w1f, b1c = fuse(w1, b1)
    w2f, b2c = fuse(w2, b2)

    kernel = _make_kernel(F, Cp, H, W, _roll_is_forward(), mxu_dtype)
    out = pl.pallas_call(
        kernel,
        out_shape=jax.ShapeDtypeStruct((steps, Cp, L), jnp.float32),
        grid_spec=pltpu.PrefetchScalarGridSpec(
            num_scalar_prefetch=0,
            grid=(steps,),
            in_specs=[
                pl.BlockSpec((1, Cp, L), lambda n: (n, 0, 0)),   # folded images
                pl.BlockSpec((Cp, 9 * Cp), lambda n: (0, 0)),    # conv1 fused taps
                pl.BlockSpec((Cp, 1), lambda n: (0, 0)),         # conv1 bias
                pl.BlockSpec((Cp, 9 * Cp), lambda n: (0, 0)),    # conv2 fused taps
                pl.BlockSpec((Cp, 1), lambda n: (0, 0)),         # conv2 bias
            ],
            out_specs=pl.BlockSpec((1, Cp, L), lambda n: (n, 0, 0)),
        ),
        compiler_params=pltpu.CompilerParams(
            dimension_semantics=("parallel",)),
    )(xf, w1f, b1c, w2f, b2c)

    out = out.reshape(steps, Cp, F, HW).transpose(0, 2, 1, 3)
    return out.reshape(N, Cp, H, W)[:, :C]


def residual_block_ref(x, w1, b1, w2, b2):
    # Pure-JAX reference mirroring the PyTorch module semantics.
    def pad(t):
        return jnp.pad(t, ((0, 0), (0, 0), (1, 1), (1, 1)), mode="reflect")

    def conv(t, w, b):
        y = jax.lax.conv_general_dilated(
            t, w, window_strides=(1, 1), padding="VALID",
            dimension_numbers=("NCHW", "OIHW", "NCHW"))
        return y + b[None, :, None, None]

    def inorm(t):
        m = jnp.mean(t, axis=(2, 3), keepdims=True)
        v = jnp.mean((t - m) ** 2, axis=(2, 3), keepdims=True)
        return (t - m) / jnp.sqrt(v + 1e-5)

    h = jnp.maximum(inorm(conv(pad(x), w1, b1)), 0.0)
    return x + inorm(conv(pad(h), w2, b2))


if __name__ == "__main__":
    N, C, H, W = 2, 4, 16, 16
    key = jax.random.PRNGKey(0)
    kx, k1, k2, k3, k4 = jax.random.split(key, 5)
    x = jax.random.normal(kx, (N, C, H, W), dtype=jnp.float32)
    # Deterministic synthetic parameters (Conv2d(in_features, in_features, 3) x2).
    w1 = jax.random.normal(k1, (C, C, 3, 3), dtype=jnp.float32) * 0.1
    b1 = jax.random.normal(k2, (C,), dtype=jnp.float32) * 0.1
    w2 = jax.random.normal(k3, (C, C, 3, 3), dtype=jnp.float32) * 0.1
    b2 = jax.random.normal(k4, (C,), dtype=jnp.float32) * 0.1

    out = jax.block_until_ready(residual_block(x, w1, b1, w2, b2))
    ref = jax.block_until_ready(residual_block_ref(x, w1, b1, w2, b2))
    assert out.shape == (N, C, H, W) and out.dtype == jnp.float32
    err = float(jnp.max(jnp.abs(out - ref)))
    assert jnp.allclose(out, ref, atol=2e-3, rtol=2e-3), err
    print("KERNEL_OK")
</pallas_src>

<mosaic_0001>
module attributes {stable_mosaic.version = 11 : i64} {
  func.func @probe(%arg0: memref<8x128xf32, #tpu.memory_space<vmem>>, %arg1: memref<8x128xf32, #tpu.memory_space<vmem>>) attributes {dimension_semantics = [], scalar_prefetch = 0 : i64, scratch_operands = 0 : i64, tpu.core_type = #tpu.core_type<tc>} {
    %c0 = arith.constant 0 : index
    %c0_0 = arith.constant 0 : index
    %0 = vector.load %arg0[%c0, %c0_0] : memref<8x128xf32, #tpu.memory_space<vmem>>, vector<8x128xf32>
    %c1_i32 = arith.constant 1 : i32
    %1 = tpu.dynamic_rotate %0 by %c1_i32 dim 1 : vector<8x128xf32>, i32 -> vector<8x128xf32>
    %c0_1 = arith.constant 0 : index
    %c0_2 = arith.constant 0 : index
    %2 = vector.load %arg1[%c0_1, %c0_2] : memref<8x128xf32, #tpu.memory_space<vmem>>, vector<8x128xf32>
    tpu.vector_store %arg1[%c0_1, %c0_2], %1 {strides = array<i32>} : memref<8x128xf32, #tpu.memory_space<vmem>>, vector<8x128xf32>,
    return
  }
}

</mosaic_0001>

<bundles_post_ra>
// kernel: tpu_custom_call.1
= control target key start
LH: loop header
LB: loop body
LE: loop exit
PB: predicated region body
PF: predicated region fallthrough
CT: control target
= control target key end

     0   :  { %6 = vsyncpa [#allocation3], 0  ;;  %s128_s0 = inlined_call_operand.hbm [shape: f32[8,128], index: 0, kind: input, shape index: {}]   ;;  %s129_s1 = inlined_call_operand.hbm [shape: f32[8,128], index: 1, kind: output, shape index: {}]  }
   0x1   :  { %7 = vsyncpa [#allocation4], 0  ;;  %s91_s6 = smov [#allocation2]   ;;  %s43_s10 = scalar_lea.hbm %s128_s0, 128 }
   0x2   :  { %s14_s7 = sshll.u32 %s91_s6, 4  ;;  %p44_p0 = scmp.ne.s32.totalorder %s128_s0, %s43_s10  ;;  %s15_s7 = int_to_ptr.vmem [resolvable:$true] %s14_s7 }
   0x3   :  { %p47_p1 = scmp.lt.u32.totalorder %s43_s10, %s128_s0 }
   0x5   :  { %p49_p2 = pnand %p47_p1, %p44_p0 }
   0x7   :  { %52 = shalt.err (!%p49_p2)
}
   0x8   :  { %s53_s15 = scalar_lea.vmem %s15_s7, 128  ;;  %p58_p4 = scmp.lt.s32.totalorder %s15_s7, %s15_s7 }
   0x9   :  { %p54_p3 = scmp.ne.s32.totalorder %s15_s7, %s53_s15  ;;  %p59_p5 = scmp.lt.s32.totalorder %s53_s15, %s53_s15 }
   0xb   :  { %p60_p6 = por %p59_p5, %p58_p4 }
   0xd   :  { %p61_p7 = pnand %p60_p6, %p54_p3 }
   0xf   :  { %64 = shalt.err (!%p61_p7)
}
  0x10   :  { %17 = dma.hbm_to_vmem [thread:$0]  %s128_s0, 128, %s15_s7, [#allocation3]  }
  0x11   :  { %87 = dma.done.wait [#allocation3], 128  }
  0x12   :  { %88 = vsyncadd [#allocation3], 4294967168  ;;  %v21_v0 = vld [vmem:[#allocation2] sm:$0xff]  ;;  %s92_s18 = smov 1   ;;  %s93_s19 = smov [#allocation5]  }
  0x13   :  { %22 = vrot.lane.b32.xlu0 %v21_v0, %s92_s18  ;;  %s31_s20 = sshll.u32 %s93_s19, 4  ;;  %s32_s20 = int_to_ptr.vmem [resolvable:$true] %s31_s20 }
  0x14   :  { %s65_s21 = scalar_lea.vmem %s32_s20, 128  ;;  %p70_p9 = scmp.lt.s32.totalorder %s32_s20, %s32_s20 }
  0x15   :  { %p66_p8 = scmp.ne.s32.totalorder %s32_s20, %s65_s21  ;;  %p71_p10 = scmp.lt.s32.totalorder %s65_s21, %s65_s21 }
  0x17   :  { %p72_p11 = por %p71_p10, %p70_p9 }
  0x19   :  { %p73_p12 = pnand %p72_p11, %p66_p8 }
  0x85   :  { %v23_v1 = vpop.permute.xlu0 %22 }
  0x86   :  { %24 = vst [vmem:[#allocation5] sm:$0xff] %v23_v1 }
  0x87   :  { %76 = shalt.err (!%p73_p12)
}
  0x88   :  { %s77_s0 = scalar_lea.hbm %s129_s1, 128 }
  0x89   :  { %p78_p13 = scmp.ne.s32.totalorder %s129_s1, %s77_s0  ;;  %p81_p0 = scmp.lt.u32.totalorder %s77_s0, %s129_s1 }
  0x8b   :  { %p83_p1 = pnand %p81_p0, %p78_p13 }
  0x8d   :  { %86 = shalt.err (!%p83_p1)
}
  0x8e   :  { %34 = dma.vmem_to_hbm [thread:$0]  %s32_s20, 128, %s129_s1, [#allocation4]  }
  0x8f   :  { %89 = dma.done.wait [#allocation4], 128  }
  0x90   :  { %90 = vsyncadd [#allocation4], 4294967168 }
  0x91   :  { %38 = vsyncpa [#allocation3], 1 }
  0x92   :  { %39 = vsyncpa [#allocation4], 1 }

</bundles_post_ra>
